<compile_context>
chip_gen: v7x
topology: tpu7x:2x2x1
jax: 0.10.0
libtpu: 0.0.40
codegen_flags: <defaults>
</compile_context>

<pallas_src>
import jax
import jax.numpy as jnp
from jax.experimental import pallas as pl
from jax.experimental.pallas import tpu as pltpu


LANE = 128  # per-gate lane alignment for the fused gate matmul


def _round_up(n, m):
    return ((n + m - 1) // m) * m


def multiclass_rnn_kernel(x_ref, wg_ref, bg_ref, wfc_ref, bfc_ref, out_ref):
    """One batch tile: fused-gate LSTM step (zero state) -> fc -> log_softmax."""
    x = x_ref[...]                                   # (TILE_N, I), f32 or bf16
    Hp = wfc_ref.shape[0]                            # lane-aligned hidden width (128-mult)

    # Single fused matmul for the i, g, o gates (forget gate dropped: f*c0 == 0).
    # Each gate lives in its own Hp-wide lane block -> slices below are vreg-aligned.
    gates = jnp.dot(x, wg_ref[...],
                    preferred_element_type=jnp.float32) + bg_ref[...]   # (TILE_N, 3*Hp) f32
    i = jax.nn.sigmoid(gates[:, 0 * Hp:1 * Hp])
    g = jnp.tanh(gates[:, 1 * Hp:2 * Hp])
    o = jax.nn.sigmoid(gates[:, 2 * Hp:3 * Hp])

    # c0 == 0  ->  c = i*g ;  h = o*tanh(c).  Padded lanes give h == 0 exactly.
    h = o * jnp.tanh(i * g)                          # (TILE_N, Hp) f32

    # fc into the narrow real class dim; padded contraction rows of wfc are zero.
    logits = jnp.dot(h, wfc_ref[...],
                     preferred_element_type=jnp.float32) + bfc_ref[...]  # (TILE_N, C) f32

    # LogSoftmax over the C real classes.
    m = jnp.max(logits, axis=-1, keepdims=True)
    z = logits - m
    lse = jnp.log(jnp.sum(jnp.exp(z), axis=-1, keepdims=True))
    out_ref[...] = (z - lse).astype(out_ref.dtype)


def init_params(key, input_size, hidden_size, output_size):
    """Deterministic PyTorch-style uniform(-1/sqrt(H), 1/sqrt(H)) init."""
    k = 1.0 / jnp.sqrt(jnp.float32(hidden_size))
    ks = jax.random.split(key, 6)
    u = lambda kk, shape: jax.random.uniform(kk, shape, jnp.float32, -k, k)
    return {
        "w_ih": u(ks[0], (4 * hidden_size, input_size)),   # gate order: i, f, g, o
        "w_hh": u(ks[1], (4 * hidden_size, hidden_size)),  # unused (h0 == 0)
        "b_ih": u(ks[2], (4 * hidden_size,)),
        "b_hh": u(ks[3], (4 * hidden_size,)),
        "w_fc": u(ks[4], (output_size, hidden_size)),
        "b_fc": u(ks[5], (output_size,)),
    }


def prepare_params(params, hidden_size, compute_dtype=jnp.float32):
    """One-time weight preprocessing (transpose / fuse / lane-align) off the hot path.

    compute_dtype: dtype used for the streamed x and the fused gate weights
    (bf16 halves the streamed HBM bytes; accumulation stays f32 in-kernel).
    """
    H = hidden_size
    C = params["w_fc"].shape[0]
    Hp = _round_up(H, LANE)                              # each gate in its own 128-lane block

    w_ih = params["w_ih"]                                # (4H, I), gate order i, f, g, o
    b = params["b_ih"] + params["b_hh"]                  # (4H,)

    gate_ids = (0, 2, 3)                                 # keep i, g, o; drop f
    w_cols, b_cols = [], []
    for k in gate_ids:
        wg = jnp.transpose(w_ih[k * H:(k + 1) * H])      # (I, H)
        w_cols.append(jnp.pad(wg, ((0, 0), (0, Hp - H))))
        b_cols.append(jnp.pad(b[k * H:(k + 1) * H], (0, Hp - H)))
    w_gates = jnp.concatenate(w_cols, axis=1).astype(compute_dtype)       # (I, 3*Hp)
    b_gates = jnp.concatenate(b_cols).reshape(1, 3 * Hp).astype(jnp.float32)

    # fc weights, transposed; contraction rows zero-padded to Hp so h stays (TILE_N, Hp).
    w_fc = jnp.pad(jnp.transpose(params["w_fc"]), ((0, Hp - H), (0, 0)))  # (Hp, C), f32
    b_fc = params["b_fc"].reshape(1, C).astype(jnp.float32)               # (1, C)

    return {
        "w_gates": w_gates, "b_gates": b_gates,
        "w_fc_pad": w_fc.astype(jnp.float32), "b_fc": b_fc,
        "hidden_size": H, "num_classes": C,
    }


def multiclass_rnn_forward(x, prepped, tile_n_max=4096):
    # TODO(synk): num_layers > 1 stacking not implemented (module default is 1).
    N, I = x.shape
    C = prepped["num_classes"]
    w_gates, b_gates = prepped["w_gates"], prepped["b_gates"]
    w_fc, b_fc = prepped["w_fc_pad"], prepped["b_fc"]
    G = w_gates.shape[1]                # 3 * Hp
    Hp = w_fc.shape[0]

    x = x.astype(w_gates.dtype)         # stream x in the same dtype as the gate weights

    # Batch tiling: large tiles amortize the per-grid-step overhead, but target >= 2 grid
    # steps when N allows so both v7x TensorCores get work.  Granularity keeps the block's
    # sublane dim legal (16 for bf16 packing, 8 for f32); a single full-batch block
    # (tile_n == N) is always legal since it equals the full array dim.
    gran = 16 if x.dtype == jnp.bfloat16 else 8
    tile_n_max = max(gran, (tile_n_max // gran) * gran)
    tile_n = min(tile_n_max, max(gran, _round_up(pl.cdiv(N, 2), gran)))
    if tile_n >= N:
        tile_n = N
    grid = (pl.cdiv(N, tile_n),)        # partial last block handled by Pallas (no jnp.pad)

    out = pl.pallas_call(
        multiclass_rnn_kernel,
        out_shape=jax.ShapeDtypeStruct((N, C), jnp.float32),   # narrow real-class output
        grid=grid,
        in_specs=[
            pl.BlockSpec((tile_n, I), lambda i: (i, 0)),       # streamed x tile
            pl.BlockSpec((I, G), lambda i: (0, 0)),            # resident fused gate weight
            pl.BlockSpec((1, G), lambda i: (0, 0)),            # resident fused gate bias
            pl.BlockSpec((Hp, C), lambda i: (0, 0)),           # resident fc weight
            pl.BlockSpec((1, C), lambda i: (0, 0)),            # resident fc bias
        ],
        out_specs=pl.BlockSpec((tile_n, C), lambda i: (i, 0)),
        compiler_params=pltpu.CompilerParams(
            dimension_semantics=("parallel",),
        ),
    )(x, w_gates, b_gates, w_fc, b_fc)

    return out                           # (N, C): no wrapper-side slice/copy needed


def reference_forward(x, params, hidden_size):
    """Pure-JAX reference mirroring the PyTorch module (f32 throughout)."""
    H = hidden_size
    gates = x @ params["w_ih"].T + params["b_ih"] + params["b_hh"]
    i = jax.nn.sigmoid(gates[:, 0 * H:1 * H])
    f = jax.nn.sigmoid(gates[:, 1 * H:2 * H])
    g = jnp.tanh(gates[:, 2 * H:3 * H])
    o = jax.nn.sigmoid(gates[:, 3 * H:4 * H])
    c = f * 0.0 + i * g                   # c0 == 0
    h = o * jnp.tanh(c)
    logits = h @ params["w_fc"].T + params["b_fc"]
    return jax.nn.log_softmax(logits, axis=1)


if __name__ == "__main__":
    N, INPUT, HIDDEN, OUTPUT = 8, 16, 32, 8

    key = jax.random.PRNGKey(0)
    kx, kp = jax.random.split(key)
    x = jax.random.normal(kx, (N, INPUT), jnp.float32)
    params = init_params(kp, INPUT, HIDDEN, OUTPUT)
    ref = reference_forward(x, params, HIDDEN)

    # f32-streamed run: strict check against the reference.
    prepped_f32 = prepare_params(params, HIDDEN, compute_dtype=jnp.float32)
    out_f32 = jax.block_until_ready(multiclass_rnn_forward(x, prepped_f32))
    assert out_f32.shape == (N, OUTPUT)
    assert jnp.allclose(out_f32, ref, atol=1e-5, rtol=1e-5), "f32 mismatch vs reference"

    # bf16-streamed run (halves streamed x/weight HBM bytes; f32 accumulate + epilogue).
    prepped_bf16 = prepare_params(params, HIDDEN, compute_dtype=jnp.bfloat16)
    out_bf16 = jax.block_until_ready(multiclass_rnn_forward(x, prepped_bf16))
    assert out_bf16.shape == (N, OUTPUT)
    assert jnp.allclose(out_bf16, ref, atol=5e-2, rtol=5e-2), "bf16 mismatch vs reference"

    print("KERNEL_OK")
</pallas_src>

<mosaic_0001>
module attributes {stable_mosaic.version = 11 : i64} {
  func.func @multiclass_rnn_kernel(%arg0: i32, %arg1: memref<8x16xf32, #tpu.memory_space<vmem>>, %arg2: memref<16x384xf32, #tpu.memory_space<vmem>>, %arg3: memref<1x384xf32, #tpu.memory_space<vmem>>, %arg4: memref<128x8xf32, #tpu.memory_space<vmem>>, %arg5: memref<1x8xf32, #tpu.memory_space<vmem>>, %arg6: memref<8x8xf32, #tpu.memory_space<vmem>>) attributes {dimension_semantics = [#tpu.dimension_semantics<parallel>], iteration_bounds = array<i64: 1>, scalar_prefetch = 0 : i64, scratch_operands = 0 : i64, tpu.core_type = #tpu.core_type<tc>, window_params = [{transform_indices = @transform_0, window_bounds = array<i64: 8, 16>}, {pipeline_mode = #tpu.pipeline_mode<synchronous>, transform_indices = @transform_1, window_bounds = array<i64: 16, 384>}, {pipeline_mode = #tpu.pipeline_mode<synchronous>, transform_indices = @transform_2, window_bounds = array<i64: 1, 384>}, {pipeline_mode = #tpu.pipeline_mode<synchronous>, transform_indices = @transform_3, window_bounds = array<i64: 128, 8>}, {pipeline_mode = #tpu.pipeline_mode<synchronous>, transform_indices = @transform_4, window_bounds = array<i64: 1, 8>}, {transform_indices = @transform_5, window_bounds = array<i64: 8, 8>}]} {
    %c0 = arith.constant 0 : index
    %c0_0 = arith.constant 0 : index
    %0 = vector.load %arg1[%c0, %c0_0] : memref<8x16xf32, #tpu.memory_space<vmem>>, vector<8x16xf32>
    %c0_1 = arith.constant 0 : index
    %c0_2 = arith.constant 0 : index
    %1 = vector.load %arg2[%c0_1, %c0_2] : memref<16x384xf32, #tpu.memory_space<vmem>>, vector<16x384xf32>
    %cst = arith.constant dense<0.000000e+00> : vector<8x384xf32>
    %2 = tpu.matmul %0, %1, %cst {dimension_numbers = #tpu.dot_dimension_numbers<[1], [0], [0], [1], [0, 0, 1, 1], [], []>} : vector<8x16xf32>, vector<16x384xf32>, vector<8x384xf32> -> vector<8x384xf32>
    %c0_3 = arith.constant 0 : index
    %c0_4 = arith.constant 0 : index
    %3 = vector.load %arg3[%c0_3, %c0_4] : memref<1x384xf32, #tpu.memory_space<vmem>>, vector<1x384xf32>
    %4 = vector.broadcast %3 : vector<1x384xf32> to vector<8x384xf32>
    %5 = arith.addf %2, %4 : vector<8x384xf32>
    %6 = vector.extract_strided_slice %5 {offsets = [0, 0], sizes = [8, 128], strides = [1, 1]} : vector<8x384xf32> to vector<8x128xf32>
    %7 = arith.negf %6 : vector<8x128xf32>
    %8 = math.exp %7 : vector<8x128xf32>
    %cst_5 = arith.constant 1.000000e+00 : f32
    %9 = vector.broadcast %cst_5 : f32 to vector<8x128xf32>
    %10 = arith.addf %9, %8 : vector<8x128xf32>
    %11 = arith.divf %9, %10 : vector<8x128xf32>
    %12 = vector.extract_strided_slice %5 {offsets = [0, 128], sizes = [8, 128], strides = [1, 1]} : vector<8x384xf32> to vector<8x128xf32>
    %13 = math.tanh %12 : vector<8x128xf32>
    %14 = vector.extract_strided_slice %5 {offsets = [0, 256], sizes = [8, 128], strides = [1, 1]} : vector<8x384xf32> to vector<8x128xf32>
    %15 = arith.negf %14 : vector<8x128xf32>
    %16 = math.exp %15 : vector<8x128xf32>
    %cst_6 = arith.constant 1.000000e+00 : f32
    %17 = vector.broadcast %cst_6 : f32 to vector<8x128xf32>
    %18 = arith.addf %17, %16 : vector<8x128xf32>
    %19 = arith.divf %17, %18 : vector<8x128xf32>
    %20 = arith.mulf %11, %13 : vector<8x128xf32>
    %21 = math.tanh %20 : vector<8x128xf32>
    %22 = arith.mulf %19, %21 : vector<8x128xf32>
    %c0_7 = arith.constant 0 : index
    %c0_8 = arith.constant 0 : index
    %23 = vector.load %arg4[%c0_7, %c0_8] : memref<128x8xf32, #tpu.memory_space<vmem>>, vector<128x8xf32>
    %cst_9 = arith.constant dense<0.000000e+00> : vector<8x8xf32>
    %24 = tpu.matmul %22, %23, %cst_9 {dimension_numbers = #tpu.dot_dimension_numbers<[1], [0], [0], [1], [0, 0, 1, 1], [], []>} : vector<8x128xf32>, vector<128x8xf32>, vector<8x8xf32> -> vector<8x8xf32>
    %c0_10 = arith.constant 0 : index
    %c0_11 = arith.constant 0 : index
    %25 = vector.load %arg5[%c0_10, %c0_11] : memref<1x8xf32, #tpu.memory_space<vmem>>, vector<1x8xf32>
    %26 = vector.broadcast %25 : vector<1x8xf32> to vector<8x8xf32>
    %27 = arith.addf %24, %26 : vector<8x8xf32>
    %cst_12 = arith.constant dense<0xFF800000> : vector<8xf32>
    %28 = vector.multi_reduction <maximumf>, %27, %cst_12 [1] : vector<8x8xf32> to vector<8xf32>
    %29 = vector.shape_cast %28 : vector<8xf32> to vector<8x1xf32>
    %30 = vector.broadcast %29 : vector<8x1xf32> to vector<8x8xf32>
    %31 = arith.subf %27, %30 : vector<8x8xf32>
    %32 = math.exp %31 : vector<8x8xf32>
    %cst_13 = arith.constant dense<0.000000e+00> : vector<8xf32>
    %33 = vector.multi_reduction <add>, %32, %cst_13 [1] : vector<8x8xf32> to vector<8xf32>
    %34 = vector.shape_cast %33 : vector<8xf32> to vector<8x1xf32>
    %35 = math.log %34 : vector<8x1xf32>
    %36 = vector.broadcast %35 : vector<8x1xf32> to vector<8x8xf32>
    %37 = arith.subf %31, %36 : vector<8x8xf32>
    %c0_14 = arith.constant 0 : index
    %c0_15 = arith.constant 0 : index
    %38 = vector.load %arg6[%c0_14, %c0_15] : memref<8x8xf32, #tpu.memory_space<vmem>>, vector<8x8xf32>
    tpu.vector_store %arg6[%c0_14, %c0_15], %37 {strides = array<i32>} : memref<8x8xf32, #tpu.memory_space<vmem>>, vector<8x8xf32>,
    return
  }
  func.func @transform_0(%arg0: i32) -> (i32, i32) {
    %c0_i32 = arith.constant 0 : i32
    %c0_i32_0 = arith.constant 0 : i32
    return %arg0, %c0_i32 : i32, i32
  }
  func.func @transform_1(%arg0: i32) -> (i32, i32) {
    %c0_i32 = arith.constant 0 : i32
    %c0_i32_0 = arith.constant 0 : i32
    %c0_i32_1 = arith.constant 0 : i32
    return %c0_i32, %c0_i32_0 : i32, i32
  }
  func.func @transform_2(%arg0: i32) -> (i32, i32) {
    %c0_i32 = arith.constant 0 : i32
    %c0_i32_0 = arith.constant 0 : i32
    %c0_i32_1 = arith.constant 0 : i32
    return %c0_i32, %c0_i32_0 : i32, i32
  }
  func.func @transform_3(%arg0: i32) -> (i32, i32) {
    %c0_i32 = arith.constant 0 : i32
    %c0_i32_0 = arith.constant 0 : i32
    %c0_i32_1 = arith.constant 0 : i32
    return %c0_i32, %c0_i32_0 : i32, i32
  }
  func.func @transform_4(%arg0: i32) -> (i32, i32) {
    %c0_i32 = arith.constant 0 : i32
    %c0_i32_0 = arith.constant 0 : i32
    %c0_i32_1 = arith.constant 0 : i32
    return %c0_i32, %c0_i32_0 : i32, i32
  }
  func.func @transform_5(%arg0: i32) -> (i32, i32) {
    %c0_i32 = arith.constant 0 : i32
    %c0_i32_0 = arith.constant 0 : i32
    return %arg0, %c0_i32 : i32, i32
  }
}

</mosaic_0001>

<bundles_post_ra>
// kernel: tpu_custom_call.1
= control target key start
LH: loop header
LB: loop body
LE: loop exit
PB: predicated region body
PF: predicated region fallthrough
CT: control target
= control target key end

     0   :  { %v469_v5 = vmov 0.0   ;;  %v470_v7 = vmov 0.0|0.0   ;;  %vm471_vm0 = vmmov 0   ;;  %s593_s0 = inlined_call_operand.vmem [shape: f32[8,16], index: 0, kind: input, shape index: {}]   ;;  %s594_s1 = inlined_call_operand.vmem [shape: f32[16,384], index: 1, kind: input, shape index: {}]   ;;  %s595_s2 = inlined_call_operand.vmem [shape: f32[1,384], index: 2, kind: input, shape index: {}]   ;;  %s596_s3 = inlined_call_operand.vmem [shape: f32[128,8], index: 3, kind: input, shape index: {}]   ;;  %s597_s4 = inlined_call_operand.vmem [shape: f32[1,8], index: 4, kind: input, shape index: {}]   ;;  %s598_s5 = inlined_call_operand.hbm [shape: f32[8,8], index: 5, kind: output, shape index: {}]  }
   0x1   :  { %v23_v0 = vld [vmem:[%s594_s1 + $0x8] sm:$0xff]  ;;  %v26_v1 = vld [vmem:[%s594_s1 + $0x20] sm:$0xff]  ;;  %v25_v4 = vld [vmem:[%s594_s1 + $0x18] sm:$0xff]  ;;  %113 = vmatprep.mubr.f32.mxu1 %v469_v5  ;;  %401 = vmatprep.subr.bf16.mxu0 %v470_v7 }
   0x2   :  { %v22_v2 = vld [vmem:[%s594_s1] sm:$0xff]  ;;  %v394_v3 = vpack.c.bf16 %v26_v1, %v23_v0  ;;  %v24_v6 = vld [vmem:[%s594_s1 + $0x10] sm:$0xff]  ;;  %v27_v9 = vld [vmem:[%s594_s1 + $0x28] sm:$0xff]  ;;  %391 = vmatprep.mubr.msk.f32.mxu0 %vm471_vm0, %v469_v5 }
   0x3   :  { %v396_v8 = vpack.c.bf16 %v25_v4, %v22_v2 }
   0x4   :  { %10 = vsyncpa [#allocation3], 0  ;;  %395 = vmatprep.subr.bf16.mxu1 %v394_v3  ;;  %v21_v10 = vld [vmem:[%s593_s0] sm:$0xff]  ;;  %vm45_vm1 = vcmask 130048   ;;  %v399_v11 = vpack.c.bf16 %v27_v9, %v24_v6  ;;  %v207_v13 = vld [vmem:[%s596_s3 + $0x8] sm:$0xff]  ;;  %v30_v36 = vlaneseq  ;;  %vm299_vm2 = vcmask 64512  }
   0x5   :  { %397 = vmatpush1.bf16.msra.mxu1 %v396_v8  ;;  %v206_v12 = vld [vmem:[%s596_s3] sm:$0xff]  ;;  %v208_v15 = vld [vmem:[%s596_s3 + $0x10] sm:$0xff]  ;;  %v209_v16 = vld [vmem:[%s596_s3 + $0x18] sm:$0xff]  ;;  %s472_s12 = smov [#allocation2]  }
   0x6   :  { %398 = vmatprep.subr.bf16.mxu1 %v470_v7  ;;  %v402_v14 = vpack.c.bf16 %v207_v13, %v206_v12  ;;  %v405_v17 = vpack.c.bf16 %v209_v16, %v208_v15  ;;  %v210_v18 = vld [vmem:[%s596_s3 + $0x20] sm:$0xff]  ;;  %v211_v19 = vld [vmem:[%s596_s3 + $0x28] sm:$0xff]  ;;  %v212_v21 = vld [vmem:[%s596_s3 + $0x30] sm:$0xff]  ;;  %v31_v37 = vshrl.u32 %v30_v36, 7 }
   0x7   :  { %v408_v20 = vpack.c.bf16 %v211_v19, %v210_v18  ;;  %v213_v22 = vld [vmem:[%s596_s3 + $0x38] sm:$0xff]  ;;  %v214_v24 = vld [vmem:[%s596_s3 + $0x40] sm:$0xff]  ;;  %v215_v25 = vld [vmem:[%s596_s3 + $0x48] sm:$0xff] }
   0x8   :  { %327 = vmatmul.mubr.msk.f32.vlgmr.msra.gmra.mrb[0].mxu1 %vm45_vm1, %v21_v10  ;;  %403 = vmatpush3.bf16.msra.mxu0 %v402_v14  ;;  %v411_v23 = vpack.c.bf16 %v213_v22, %v212_v21  ;;  %v414_v26 = vpack.c.bf16 %v215_v25, %v214_v24  ;;  %v216_v27 = vld [vmem:[%s596_s3 + $0x50] sm:$0xff]  ;;  %v217_v28 = vld [vmem:[%s596_s3 + $0x58] sm:$0xff]  ;;  %v218_v30 = vld [vmem:[%s596_s3 + $0x60] sm:$0xff]  ;;  %v32_v38 = vsub.s32 0, %v31_v37  ;;  %v40_v41 = vsub.s32 2, %v31_v37 }
   0x9   :  { %400 = vmatpush3.bf16.msra.mxu1 %v399_v11  ;;  %356 = vmatprep.mubr.msk.f32.mxu1 %vm471_vm0, %v469_v5  ;;  %v417_v29 = vpack.c.bf16 %v217_v28, %v216_v27  ;;  %v219_v31 = vld [vmem:[%s596_s3 + $0x68] sm:$0xff]  ;;  %v220_v33 = vld [vmem:[%s596_s3 + $0x70] sm:$0xff]  ;;  %v221_v34 = vld [vmem:[%s596_s3 + $0x78] sm:$0xff]  ;;  %v36_v48 = vsub.s32 1, %v31_v37 }
   0xa   :  { %404 = vmatprep.subr.bf16.mxu0 %v470_v7  ;;  %v420_v32 = vpack.c.bf16 %v219_v31, %v218_v30  ;;  %v423_v35 = vpack.c.bf16 %v221_v34, %v220_v33  ;;  %v28_v39 = vld [vmem:[%s595_s2] sm:$0x7] }
   0xb   :  { %v33_v40 = vrot.slane %v28_v39, %v32_v38  ;;  %v41_v45 = vrot.slane %v28_v39, %v40_v41  ;;  %v37_v52 = vrot.slane %v28_v39, %v36_v48  ;;  %v331_v0 = vld [vmem:[%s597_s4] ss:$0 sm:$0xff]  ;;  %s319_s4 = sshll.u32 %s472_s12, 4  ;;  %s320_s4 = int_to_ptr.vmem [resolvable:$true] %s319_s4 }
   0xc   :  { %357 = vmatmul.mubr.msk.f32.vlgmr.msra.gmra.mrb[2].mxu1 %vm45_vm1, %v21_v10  ;;  %406 = vmatpush3.bf16.msra.mxu0 %v405_v17  ;;  %s445_s13 = scalar_lea.vmem %s320_s4, 128  ;;  %p450_p1 = scmp.lt.s32.totalorder %s320_s4, %s320_s4 }
   0xd   :  { %407 = vmatprep.subr.bf16.mxu0 %v470_v7  ;;  %p446_p0 = scmp.ne.s32.totalorder %s320_s4, %s445_s13  ;;  %p451_p2 = scmp.lt.s32.totalorder %s445_s13, %s445_s13 }
   0xf   :  { %p452_p3 = por %p451_p2, %p450_p1 }
  0x10   :  { %409 = vmatpush3.bf16.msra.mxu0 %v408_v20 }
  0x11   :  { %410 = vmatprep.subr.bf16.mxu0 %v470_v7  ;;  %p453_p4 = pnand %p452_p3, %p446_p0 }
  0x14   :  { %412 = vmatpush3.bf16.msra.mxu0 %v411_v23 }
  0x15   :  { %413 = vmatprep.subr.bf16.mxu0 %v470_v7 }
  0x18   :  { %415 = vmatpush3.bf16.msra.mxu0 %v414_v26 }
  0x19   :  { %416 = vmatprep.subr.bf16.mxu0 %v470_v7 }
  0x1c   :  { %418 = vmatpush3.bf16.msra.mxu0 %v417_v29 }
  0x1d   :  { %419 = vmatprep.subr.bf16.mxu0 %v470_v7 }
  0x20   :  { %421 = vmatpush3.bf16.msra.mxu0 %v420_v32 }
  0x21   :  { %422 = vmatprep.subr.bf16.mxu0 %v470_v7 }
  0x24   :  { %424 = vmatpush3.bf16.msra.mxu0 %v423_v35 }
  0xdb   :  { %v115_v42 = vpop.f32.mrb[0].mxu1 }
  0xdc   :  { %v116_v43 = vadd.f32 %v115_v42, %v33_v40  ;;  %v117_v44 = vpop.f32.mrb[1].mxu1 }
  0xdd   :  { %v118_v53 = vadd.f32 %v117_v44, %v37_v52 }
  0xde   :  { %v329_v46 = vmul.f32 -1.442695, %v116_v43 }
  0xdf   :  { %v186_v47 = vpop.f32.mrb[2].mxu1 }
  0xe0   :  { %429 = vpow2.f32 %v329_v46  ;;  %v187_v49 = vadd.f32 %v186_v47, %v41_v45  ;;  %v358_v50 = vpop.f32.mrb[3].mxu1 }
  0xe2   :  { %v330_v51 = vmul.f32 -1.442695, %v187_v49 }
  0xe4   :  { %431 = vpow2.f32 %v330_v51 }
  0xe5   :  { %433 = vtanh.f32 %v118_v53 }
  0xea   :  { %v430_v54 = vpop.eup %429 }
  0xeb   :  { %v193_v55 = vadd.f32 1.0, %v430_v54 }
  0xed   :  { %435 = vrcp.f32 %v193_v55 }
  0xee   :  { %v432_v56 = vpop.eup %431 }
  0xef   :  { %v200_v57 = vadd.f32 1.0, %v432_v56  ;;  %v434_v58 = vpop.eup %433 }
  0xf1   :  { %437 = vrcp.f32 %v200_v57 }
  0xf7   :  { %v436_v59 = vpop.eup %435 }
  0xf8   :  { %v203_v60 = vmul.f32 %v436_v59, %v434_v58 }
  0xfa   :  { %439 = vtanh.f32 %v203_v60 }
  0xfb   :  { %v438_v61 = vpop.eup %437 }
 0x104   :  { %v440_v62 = vpop.eup %439 }
 0x105   :  { %v205_v63 = vmul.f32 %v440_v62, %v438_v61 }
 0x107   :  { %392 = vmatmul.mubr.f32.vlgmr.msra.gmra.mrb[0].mxu0 %v205_v63 }
 0x1da   :  { %v295_v1 = vpop.f32.mrb[0].mxu0 }
 0x1db   :  { %v296_v2 = vadd.f32 %v331_v0, %v295_v1  ;;  %v393_v3 = vpop.f32.mrb[1].mxu0 }
 0x1dd   :  { %v300_v4 = vsel %vm299_vm2, %v296_v2, -inf }
 0x1de   :  { %301 = vmax.xlane.f32.xlu0 %v300_v4 }
 0x26b   :  { %v302_v5 = vpop.xlane.xlu0 %301 }
 0x26c   :  { %v303_v6 = vsub.f32 %v296_v2, %v302_v5 }
 0x26e   :  { %v304_v7 = vmul.f32 1.442695, %v303_v6 }
 0x270   :  { %441 = vpow2.f32 %v304_v7 }
 0x27a   :  { %v442_v8 = vpop.eup %441 }
 0x27b   :  { %v306_v9 = vsel %vm299_vm2, %v442_v8, 0.0 }
 0x27c   :  { %307 = vadd.xlane.f32.xlu0 %v306_v9 }
 0x309   :  { %v308_v10 = vpop.xlane.xlu0 %307 }
 0x30a   :  { %443 = vlog2.f32 %v308_v10 }
 0x314   :  { %v444_v11 = vpop.eup %443 }
 0x315   :  { %v310_v12 = vmul.f32 0.6931472, %v444_v11 }
 0x317   :  { %v311_v13 = vsub.f32 %v303_v6, %v310_v12 }
 0x319   :  { %312 = vst.msk [vmem:[#allocation2] sm:$0xff] %vm299_vm2, %v311_v13 }
 0x31a   :  { %456 = shalt.err (!%p453_p4)
}
 0x31b   :  { %s457_s16 = scalar_lea.hbm %s598_s5, 128 }
 0x31c   :  { %p458_p5 = scmp.ne.s32.totalorder %s598_s5, %s457_s16  ;;  %p461_p6 = scmp.lt.u32.totalorder %s457_s16, %s598_s5 }
 0x31e   :  { %p463_p7 = pnand %p461_p6, %p458_p5 }
 0x320   :  { %466 = shalt.err (!%p463_p7)
}
 0x321   :  { %322 = dma.vmem_to_hbm [thread:$0]  %s320_s4, 128, %s598_s5, [#allocation3]  }
 0x322   :  { %467 = dma.done.wait [#allocation3], 128  }
 0x323   :  { %468 = vsyncadd [#allocation3], 4294967168 }
 0x324   :  { %326 = vsyncpa [#allocation3], 1 }

</bundles_post_ra>
